<compile_context>
chip_gen: v7x
topology: tpu7x:2x2x1
jax: 0.10.0
libtpu: 0.0.40
codegen_flags: <defaults>
</compile_context>

<pallas_src>
import functools

import jax
import jax.numpy as jnp
from jax import lax
from jax.experimental import pallas as pl
from jax.experimental.pallas import tpu as pltpu


# ---------------------------------------------------------------------------
# Fused ASPP kernel: branches 1-4 + conv_cat projection + BN/ReLU epilogue
# ---------------------------------------------------------------------------
def fused_aspp_kernel(xp_hbm, w1_ref, w234_ref, wc4_ref, s4_ref, b4_ref,
                      gap_ref, sc_ref, bc_ref, o_ref, xstrip, acc_ref, sem,
                      *, TH, W, dmax, dils):
    """One (batch, row-strip) tile of the fully fused ASPP forward.

    xp_hbm : (N, H_pad+2*dmax, W+2*dmax, Cin) bf16, raw HBM ref (pl.ANY)
    w1     : (Cin, Cout)      bf16  branch-1 1x1 weights
    w234   : (27, Cin, Cout)  bf16  branches 2-4 taps, [branch*9 + kh*3 + kw]
    wc4    : (4, Cout, Cout)  bf16  conv_cat slices for branches 1-4
    s4/b4  : (4, Cout)        f32   folded BN scale/bias for branches 1-4
    gap    : (1, 1, Cout)     f32   per-batch GAP-branch contribution
    sc/bc  : (1, Cout)        f32   folded BN of conv_cat
    o_ref  : (1, TH, W, Cout)       output row strip
    xstrip : VMEM (2, TH+2*dmax, W+2*dmax, Cin) bf16 double-buffered strip
    acc_ref: VMEM (TH*W, Cout) f32  conv_cat accumulator
    sem    : DMA semaphores (2,)
    """
    n = pl.program_id(0)
    h = pl.program_id(1)
    nH = pl.num_programs(1)
    Cin = xstrip.shape[-1]
    Cout = w1_ref.shape[-1]
    Hs = TH + 2 * dmax

    slot = h & 1
    r0 = pl.multiple_of(h * TH, 8)            # TH is always a multiple of 8

    # The first strip of each batch was not prefetched by an earlier step.
    @pl.when(h == 0)
    def _():
        pltpu.make_async_copy(xp_hbm.at[n, pl.ds(r0, Hs)],
                              xstrip.at[slot], sem.at[slot]).start()

    # Prefetch the NEXT strip of the SAME batch into the other slot (P4).
    # Never crosses a batch boundary -> safe under megacore batch sharding.
    @pl.when(h + 1 < nH)
    def _():
        pltpu.make_async_copy(xp_hbm.at[n, pl.ds(r0 + TH, Hs)],
                              xstrip.at[1 - slot], sem.at[1 - slot]).start()

    # Wait only for the strip this step computes on.
    pltpu.make_async_copy(xp_hbm.at[n, pl.ds(r0, Hs)],
                          xstrip.at[slot], sem.at[slot]).wait()
    strip = xstrip.at[slot]

    # conv_cat accumulator lives in VMEM: only one (TH*W, Cout) f32 value
    # (the per-branch pre-BN activation) is live in vregs at a time.
    acc_ref[...] = jnp.broadcast_to(gap_ref[0], (TH * W, Cout))   # GAP bias

    def bn_relu_project(y, idx):
        # folded BN + ReLU (f32), then fold into the conv_cat projection.
        s = s4_ref[idx].reshape(1, Cout)
        b = b4_ref[idx].reshape(1, Cout)
        y = jnp.maximum(y * s + b, 0.0)
        return jnp.dot(y.astype(jnp.bfloat16), wc4_ref[idx],
                       preferred_element_type=jnp.float32)

    # ----- branch 1: 1x1 conv on the strip interior --------------------------
    x_in = strip[pl.ds(dmax, TH), pl.ds(dmax, W), :].reshape(TH * W, Cin)
    y1 = jnp.dot(x_in, w1_ref[...], preferred_element_type=jnp.float32)
    acc_ref[...] += bn_relu_project(y1, 0)

    # ----- branches 2-4: dilated 3x3 convs (static tap offsets) --------------
    for bi, d in enumerate(dils):
        yb = jnp.zeros((TH * W, Cout), jnp.float32)
        for kh in range(3):
            for kw in range(3):
                if kh == 1 and kw == 1:
                    patch = x_in                      # centre tap reuses x_in
                else:
                    patch = strip[pl.ds(dmax - d + kh * d, TH),
                                  pl.ds(dmax - d + kw * d, W), :].reshape(TH * W, Cin)
                yb = yb + jnp.dot(patch, w234_ref[bi * 9 + kh * 3 + kw],
                                  preferred_element_type=jnp.float32)
        acc_ref[...] += bn_relu_project(yb, bi + 1)

    # ----- conv_cat BN + ReLU epilogue ---------------------------------------
    out = jnp.maximum(acc_ref[...] * sc_ref[...] + bc_ref[...], 0.0)
    # TODO(synk): lane-dense (TH, W*Cout) store layout when Cout % 128 != 0.
    o_ref[0] = out.reshape(TH, W, Cout).astype(o_ref.dtype)


# ---------------------------------------------------------------------------
# GAP branch: tiled spatial reduction -> bn5/relu -> project through Wc[4C:5C]
# ---------------------------------------------------------------------------
def gap_projection_kernel(x_ref, w5_ref, wc5_ref, s5_ref, b5_ref, o_ref,
                          sum_ref, *, inv_hw):
    h = pl.program_id(1)

    @pl.when(h == 0)
    def _():
        sum_ref[...] = jnp.zeros_like(sum_ref)

    _, THg, Wg, Cin = x_ref.shape
    x2 = x_ref[0].reshape(THg * Wg, Cin)                       # bf16, no f32 copy
    ones = jnp.ones((1, THg * Wg), jnp.bfloat16)
    sum_ref[...] += jnp.dot(ones, x2, preferred_element_type=jnp.float32)

    # Projection is tiny; compute every step, last step's value is what lands.
    mean = sum_ref[...] * inv_hw                               # (1, Cin) f32
    y = jnp.dot(mean.astype(jnp.bfloat16), w5_ref[...],
                preferred_element_type=jnp.float32)
    y = jnp.maximum(y * s5_ref[...] + b5_ref[...], 0.0)
    o_ref[0] = jnp.dot(y.astype(jnp.bfloat16), wc5_ref[...],
                       preferred_element_type=jnp.float32)


# ---------------------------------------------------------------------------
# pallas_call wrappers
# ---------------------------------------------------------------------------
def gap_projection(x_bf, w5, wc5, s5, b5, *, gap_rows):
    N, H, W, Cin = x_bf.shape
    Cout = w5.shape[1]
    nHg = H // gap_rows
    kernel = functools.partial(gap_projection_kernel, inv_hw=1.0 / (H * W))
    return pl.pallas_call(
        kernel,
        out_shape=jax.ShapeDtypeStruct((N, 1, Cout), jnp.float32),
        grid=(N, nHg),
        in_specs=[
            pl.BlockSpec((1, gap_rows, W, Cin), lambda n, h: (n, h, 0, 0)),
            pl.BlockSpec((Cin, Cout), lambda n, h: (0, 0)),
            pl.BlockSpec((Cout, Cout), lambda n, h: (0, 0)),
            pl.BlockSpec((1, Cout), lambda n, h: (0, 0)),
            pl.BlockSpec((1, Cout), lambda n, h: (0, 0)),
        ],
        out_specs=pl.BlockSpec((1, 1, Cout), lambda n, h: (n, 0, 0)),
        scratch_shapes=[pltpu.VMEM((1, Cin), jnp.float32)],
        compiler_params=pltpu.CompilerParams(
            dimension_semantics=("parallel", "arbitrary")),
    )(x_bf, w5, wc5, s5, b5)


def fused_aspp(xp_bf, w1, w234, wc4, s4, b4, gap, sc, bc, *,
               N, H_pad, W, Cin, Cout, TH, dmax, dils, out_dtype,
               vmem_limit, single_buffer_weights):
    Hs = TH + 2 * dmax
    Wp = W + 2 * dmax
    nH = H_pad // TH
    kernel = functools.partial(fused_aspp_kernel, TH=TH, W=W, dmax=dmax, dils=dils)

    # Constant weight blocks: single-buffered so they are VMEM-resident once.
    const_kw = {"pipeline_mode": pl.Buffered(1)} if single_buffer_weights else {}
    in_specs = [
        pl.BlockSpec(memory_space=pl.ANY),                                 # padded x (HBM)
        pl.BlockSpec((Cin, Cout), lambda n, h: (0, 0), **const_kw),        # w1
        pl.BlockSpec((27, Cin, Cout), lambda n, h: (0, 0, 0), **const_kw), # w2..w4 taps
        pl.BlockSpec((4, Cout, Cout), lambda n, h: (0, 0, 0), **const_kw), # wc slices 1-4
        pl.BlockSpec((4, Cout), lambda n, h: (0, 0), **const_kw),          # branch BN scale
        pl.BlockSpec((4, Cout), lambda n, h: (0, 0), **const_kw),          # branch BN bias
        pl.BlockSpec((1, 1, Cout), lambda n, h: (n, 0, 0)),                # gap contribution
        pl.BlockSpec((1, Cout), lambda n, h: (0, 0), **const_kw),          # conv_cat BN scale
        pl.BlockSpec((1, Cout), lambda n, h: (0, 0), **const_kw),          # conv_cat BN bias
    ]
    return pl.pallas_call(
        kernel,
        out_shape=jax.ShapeDtypeStruct((N, H_pad, W, Cout), out_dtype),
        grid=(N, nH),
        in_specs=in_specs,
        out_specs=pl.BlockSpec((1, TH, W, Cout), lambda n, h: (n, h, 0, 0)),
        scratch_shapes=[
            pltpu.VMEM((2, Hs, Wp, Cin), jnp.bfloat16),   # double-buffered strip
            pltpu.VMEM((TH * W, Cout), jnp.float32),      # conv_cat accumulator
            pltpu.SemaphoreType.DMA((2,)),
        ],
        compiler_params=pltpu.CompilerParams(
            # batch: parallel (megacore on v7x); strips: arbitrary (defined
            # order is required by the next-strip prefetch chain).
            dimension_semantics=("parallel", "arbitrary"),
            vmem_limit_bytes=vmem_limit,
        ),
    )(xp_bf, w1, w234, wc4, s4, b4, gap, sc, bc)


# ---------------------------------------------------------------------------
# Generation-aware VMEM budget and row-tile selection
# ---------------------------------------------------------------------------
def _round_up(x, m):
    return ((x + m - 1) // m) * m


def _vmem_budget_bytes():
    cap = 128 * 1024 * 1024
    try:
        cap = int(pltpu.get_tpu_info().vmem_capacity_bytes)
    except Exception:
        pass
    # ~48 MiB on v7x (64 MiB/TC), ~96 MiB on v5e/v6e (128 MiB).
    return min(int(cap * 3 // 4), 100 * 1024 * 1024)


def _choose_tile_rows(H, W, Cin, Cout, dmax, budget, out_bytes, max_rows=128):
    """Largest-budget-fitting TH (multiple of 8) minimising halo re-reads."""
    wp = W + 2 * dmax
    weight_bytes = (28 * Cin * Cout + 4 * Cout * Cout) * 2 + 16 * Cout * 4
    slack = 4 * 1024 * 1024                    # compiler-internal scratch headroom
    cap = min(max(8, _round_up(H, 8)), max_rows)
    best, best_cost = None, None
    th = 8
    while th <= cap:
        hs = th + 2 * dmax
        need = (2 * hs * wp * Cin * 2          # double-buffered strip (bf16)
                + th * W * Cout * 4            # acc scratch (f32)
                + 2 * th * W * Cout * out_bytes  # double-buffered output block
                + weight_bytes + slack)
        if need <= budget:
            n_strips = -(-H // th)
            cost = n_strips * (2 * th + 2 * dmax)   # HBM-read rows + compute waste
            if best is None or cost < best_cost or (cost == best_cost and th > best):
                best, best_cost = th, cost
        th += 8
    if best is None:
        # TODO(synk): Cin / W tiling for configs where even TH=8 does not fit.
        best = 8
    return best


def _pick_gap_rows(H, W, Cin, max_bytes=2 * 1024 * 1024):
    fitting = [t for t in range(1, H + 1)
               if H % t == 0 and t * W * Cin * 2 <= max_bytes]
    return max(fitting) if fitting else 1


# ---------------------------------------------------------------------------
# ASPP forward (glue in plain JAX, hot path in Pallas)
# ---------------------------------------------------------------------------
def aspp_forward(x_nchw, p, rate, tile_rows=None, out_dtype=jnp.float32):
    x = jnp.transpose(x_nchw, (0, 2, 3, 1)).astype(jnp.float32)       # NCHW -> NHWC
    N, H, W, Cin = x.shape
    Cout = p["w1"].shape[1]
    dils = (rate * 6, rate * 12, rate * 18)
    dmax = dils[-1]

    vmem_budget = _vmem_budget_bytes()
    out_bytes = jnp.dtype(out_dtype).itemsize
    if tile_rows is None:
        TH = _choose_tile_rows(H, W, Cin, Cout, dmax, vmem_budget, out_bytes)
    else:
        TH = min(max(8, (tile_rows // 8) * 8), max(8, _round_up(H, 8)))
    H_pad = _round_up(H, TH)

    # bf16 activations / weights (f32 accumulation happens inside the kernels).
    x_bf = x.astype(jnp.bfloat16)
    # Pad ONCE (rows also padded up to H_pad so the last strip stays in-bounds).
    xp_bf = jnp.pad(x_bf, ((0, 0), (dmax, dmax + H_pad - H), (dmax, dmax), (0, 0)))

    w1_bf = p["w1"].astype(jnp.bfloat16)
    w234_bf = jnp.concatenate([p["w2"], p["w3"], p["w4"]], axis=0).astype(jnp.bfloat16)
    wc = p["wc"]                                                      # (5*Cout, Cout)
    wc4_bf = wc[:4 * Cout].reshape(4, Cout, Cout).astype(jnp.bfloat16)
    wc5_bf = wc[4 * Cout:].astype(jnp.bfloat16)
    w5_bf = p["w5"].astype(jnp.bfloat16)

    s4 = jnp.concatenate([p["s1"], p["s2"], p["s3"], p["s4"]], axis=0)  # (4, Cout)
    b4 = jnp.concatenate([p["b1"], p["b2"], p["b3"], p["b4"]], axis=0)  # (4, Cout)

    gap_rows = _pick_gap_rows(H, W, Cin)
    gap = gap_projection(x_bf, w5_bf, wc5_bf, p["s5"], p["b5"],
                         gap_rows=gap_rows)                             # (N, 1, Cout)

    kwargs = dict(N=N, H_pad=H_pad, W=W, Cin=Cin, Cout=Cout, TH=TH, dmax=dmax,
                  dils=dils, out_dtype=out_dtype, vmem_limit=vmem_budget)
    try:
        y = fused_aspp(xp_bf, w1_bf, w234_bf, wc4_bf, s4, b4, gap,
                       p["sc"], p["bc"], single_buffer_weights=True, **kwargs)
        y = jax.block_until_ready(y)
    except Exception:
        # pl.Buffered(1) (single-buffered resident weights) unsupported on this
        # jax version -> fall back to default double-buffered weight blocks.
        y = fused_aspp(xp_bf, w1_bf, w234_bf, wc4_bf, s4, b4, gap,
                       p["sc"], p["bc"], single_buffer_weights=False, **kwargs)

    if H_pad != H:
        y = y[:, :H]
    return jnp.transpose(y, (0, 3, 1, 2))                              # NHWC -> NCHW


# ---------------------------------------------------------------------------
# Pure-JAX reference (same bf16-operand / f32-accumulate precision)
# ---------------------------------------------------------------------------
def aspp_reference(x_nchw, p, rate):
    x = jnp.transpose(x_nchw, (0, 2, 3, 1))
    xb = x.astype(jnp.bfloat16)

    def bnrelu(y, s, b):
        return jnp.maximum(y * s.reshape(1, 1, 1, -1) + b.reshape(1, 1, 1, -1), 0.0)

    def mm(a, w):
        return jnp.einsum("nhwc,cd->nhwd", a.astype(jnp.bfloat16),
                          w.astype(jnp.bfloat16),
                          preferred_element_type=jnp.float32)

    def dil(w9, d):
        w = w9.reshape(3, 3, w9.shape[1], w9.shape[2]).astype(jnp.bfloat16)
        return lax.conv_general_dilated(
            xb, w, window_strides=(1, 1), padding=[(d, d), (d, d)],
            rhs_dilation=(d, d), dimension_numbers=("NHWC", "HWIO", "NHWC"),
            preferred_element_type=jnp.float32)

    b1 = bnrelu(mm(x, p["w1"]), p["s1"], p["b1"])
    b2 = bnrelu(dil(p["w2"], rate * 6), p["s2"], p["b2"])
    b3 = bnrelu(dil(p["w3"], rate * 12), p["s3"], p["b3"])
    b4 = bnrelu(dil(p["w4"], rate * 18), p["s4"], p["b4"])
    g = jnp.mean(xb.astype(jnp.float32), axis=(1, 2), keepdims=True)
    b5 = bnrelu(mm(g, p["w5"]), p["s5"], p["b5"])
    b5 = jnp.broadcast_to(b5, b1.shape)
    cat = jnp.concatenate([b1, b2, b3, b4, b5], axis=-1)
    out = bnrelu(mm(cat, p["wc"]), p["sc"], p["bc"])
    return jnp.transpose(out, (0, 3, 1, 2))


# ---------------------------------------------------------------------------
# Deterministic parameter init (synthetic, PyTorch shapes transposed)
# ---------------------------------------------------------------------------
def init_bn(k, c, eps=1e-5):
    k1, k2, k3, k4 = jax.random.split(k, 4)
    gamma = jax.random.uniform(k1, (c,), minval=0.5, maxval=1.5)
    beta = 0.1 * jax.random.normal(k2, (c,))
    mean = 0.1 * jax.random.normal(k3, (c,))
    var = jax.random.uniform(k4, (c,), minval=0.5, maxval=1.5)
    scale = gamma / jnp.sqrt(var + eps)
    bias = beta - mean * scale
    return (scale.reshape(1, c).astype(jnp.float32),
            bias.reshape(1, c).astype(jnp.float32))


def init_params(key, cin, cout):
    ks = jax.random.split(key, 12)
    p = {}
    p["w1"] = (jax.random.normal(ks[0], (cin, cout)) / jnp.sqrt(cin)).astype(jnp.float32)
    p["w2"] = (jax.random.normal(ks[1], (9, cin, cout)) / jnp.sqrt(9 * cin)).astype(jnp.float32)
    p["w3"] = (jax.random.normal(ks[2], (9, cin, cout)) / jnp.sqrt(9 * cin)).astype(jnp.float32)
    p["w4"] = (jax.random.normal(ks[3], (9, cin, cout)) / jnp.sqrt(9 * cin)).astype(jnp.float32)
    p["w5"] = (jax.random.normal(ks[4], (cin, cout)) / jnp.sqrt(cin)).astype(jnp.float32)
    p["wc"] = (jax.random.normal(ks[5], (5 * cout, cout)) / jnp.sqrt(5 * cout)).astype(jnp.float32)
    p["s1"], p["b1"] = init_bn(ks[6], cout)
    p["s2"], p["b2"] = init_bn(ks[7], cout)
    p["s3"], p["b3"] = init_bn(ks[8], cout)
    p["s4"], p["b4"] = init_bn(ks[9], cout)
    p["s5"], p["b5"] = init_bn(ks[10], cout)
    p["sc"], p["bc"] = init_bn(ks[11], cout)
    return p


if __name__ == "__main__":
    N, DIM_IN, DIM_OUT, H, W, RATE = 2, 4, 8, 16, 16, 1

    key = jax.random.PRNGKey(0)
    kx, kp = jax.random.split(key)
    x = jax.random.normal(kx, (N, DIM_IN, H, W), dtype=jnp.float32)   # NCHW like PyTorch
    params = init_params(kp, DIM_IN, DIM_OUT)

    # tile_rows=8 forces 2 row strips per batch so the double-buffered strip
    # DMA / prefetch path is exercised even at this tiny test size.
    # Production callers should leave tile_rows=None (auto, generation-aware).
    out = aspp_forward(x, params, RATE, tile_rows=8)
    out = jax.block_until_ready(out)
    assert out.shape == (N, DIM_OUT, H, W), out.shape

    ref = jax.block_until_ready(aspp_reference(x, params, RATE))
    max_err = float(jnp.max(jnp.abs(out - ref)))
    assert jnp.allclose(out, ref, atol=2e-2, rtol=2e-2), max_err

    print("KERNEL_OK")
</pallas_src>

<mosaic_0001>
module attributes {stable_mosaic.version = 11 : i64} {
  func.func @gap_projection_kernel(%arg0: i32, %arg1: i32, %arg2: memref<1x16x16x4xbf16, #tpu.memory_space<vmem>>, %arg3: memref<4x8xbf16, #tpu.memory_space<vmem>>, %arg4: memref<8x8xbf16, #tpu.memory_space<vmem>>, %arg5: memref<1x8xf32, #tpu.memory_space<vmem>>, %arg6: memref<1x8xf32, #tpu.memory_space<vmem>>, %arg7: memref<1x1x8xf32, #tpu.memory_space<vmem>>, %arg8: memref<1x4xf32, #tpu.memory_space<vmem>>) attributes {dimension_semantics = [#tpu.dimension_semantics<parallel>, #tpu.dimension_semantics<arbitrary>], iteration_bounds = array<i64: 2, 1>, scalar_prefetch = 0 : i64, scratch_operands = 1 : i64, tpu.core_type = #tpu.core_type<tc>, window_params = [{transform_indices = @transform_0, window_bounds = array<i64: 1, 16, 16, 4>}, {pipeline_mode = #tpu.pipeline_mode<synchronous>, transform_indices = @transform_1, window_bounds = array<i64: 4, 8>}, {pipeline_mode = #tpu.pipeline_mode<synchronous>, transform_indices = @transform_2, window_bounds = array<i64: 8, 8>}, {pipeline_mode = #tpu.pipeline_mode<synchronous>, transform_indices = @transform_3, window_bounds = array<i64: 1, 8>}, {pipeline_mode = #tpu.pipeline_mode<synchronous>, transform_indices = @transform_4, window_bounds = array<i64: 1, 8>}, {transform_indices = @transform_5, window_bounds = array<i64: 1, 1, 8>}]} {
    %c0_i32 = arith.constant 0 : i32
    %0 = arith.cmpi eq, %arg1, %c0_i32 : i32
    %1 = arith.extui %0 : i1 to i32
    %c0_i32_0 = arith.constant 0 : i32
    %2 = arith.cmpi ne, %1, %c0_i32_0 : i32
    scf.if %2 {
      %cst_26 = arith.constant 0.000000e+00 : f32
      %29 = vector.broadcast %cst_26 : f32 to vector<1x4xf32>
      %c0_27 = arith.constant 0 : index
      %c0_28 = arith.constant 0 : index
      %30 = vector.load %arg8[%c0_27, %c0_28] : memref<1x4xf32, #tpu.memory_space<vmem>>, vector<1x4xf32>
      tpu.vector_store %arg8[%c0_27, %c0_28], %29 {strides = array<i32>} : memref<1x4xf32, #tpu.memory_space<vmem>>, vector<1x4xf32>,
    } else {
    }
    %c0 = arith.constant 0 : index
    %c0_1 = arith.constant 0 : index
    %c0_2 = arith.constant 0 : index
    %c0_3 = arith.constant 0 : index
    %3 = vector.load %arg2[%c0, %c0_1, %c0_2, %c0_3] : memref<1x16x16x4xbf16, #tpu.memory_space<vmem>>, vector<1x16x16x4xbf16>
    %4 = vector.shape_cast %3 : vector<1x16x16x4xbf16> to vector<16x16x4xbf16>
    %5 = vector.shape_cast %4 : vector<16x16x4xbf16> to vector<256x4xbf16>
    %cst = arith.constant 1.000000e+00 : bf16
    %6 = vector.broadcast %cst : bf16 to vector<1x256xbf16>
    %c0_4 = arith.constant 0 : index
    %c0_5 = arith.constant 0 : index
    %7 = vector.load %arg8[%c0_4, %c0_5] : memref<1x4xf32, #tpu.memory_space<vmem>>, vector<1x4xf32>
    %cst_6 = arith.constant dense<0.000000e+00> : vector<1x4xf32>
    %8 = tpu.matmul %6, %5, %cst_6 {dimension_numbers = #tpu.dot_dimension_numbers<[1], [0], [0], [1], [0, 0, 1, 1], [], []>} : vector<1x256xbf16>, vector<256x4xbf16>, vector<1x4xf32> -> vector<1x4xf32>
    %9 = arith.addf %7, %8 : vector<1x4xf32>
    %c0_7 = arith.constant 0 : index
    %c0_8 = arith.constant 0 : index
    %10 = vector.load %arg8[%c0_7, %c0_8] : memref<1x4xf32, #tpu.memory_space<vmem>>, vector<1x4xf32>
    tpu.vector_store %arg8[%c0_7, %c0_8], %9 {strides = array<i32>} : memref<1x4xf32, #tpu.memory_space<vmem>>, vector<1x4xf32>,
    %c0_9 = arith.constant 0 : index
    %c0_10 = arith.constant 0 : index
    %11 = vector.load %arg8[%c0_9, %c0_10] : memref<1x4xf32, #tpu.memory_space<vmem>>, vector<1x4xf32>
    %cst_11 = arith.constant 3.906250e-03 : f32
    %12 = vector.broadcast %cst_11 : f32 to vector<1x4xf32>
    %13 = arith.mulf %11, %12 : vector<1x4xf32>
    %14 = arith.truncf %13 : vector<1x4xf32> to vector<1x4xbf16>
    %c0_12 = arith.constant 0 : index
    %c0_13 = arith.constant 0 : index
    %15 = vector.load %arg3[%c0_12, %c0_13] : memref<4x8xbf16, #tpu.memory_space<vmem>>, vector<4x8xbf16>
    %cst_14 = arith.constant dense<0.000000e+00> : vector<1x8xf32>
    %16 = tpu.matmul %14, %15, %cst_14 {dimension_numbers = #tpu.dot_dimension_numbers<[1], [0], [0], [1], [0, 0, 1, 1], [], []>} : vector<1x4xbf16>, vector<4x8xbf16>, vector<1x8xf32> -> vector<1x8xf32>
    %c0_15 = arith.constant 0 : index
    %c0_16 = arith.constant 0 : index
    %17 = vector.load %arg5[%c0_15, %c0_16] : memref<1x8xf32, #tpu.memory_space<vmem>>, vector<1x8xf32>
    %18 = arith.mulf %16, %17 : vector<1x8xf32>
    %c0_17 = arith.constant 0 : index
    %c0_18 = arith.constant 0 : index
    %19 = vector.load %arg6[%c0_17, %c0_18] : memref<1x8xf32, #tpu.memory_space<vmem>>, vector<1x8xf32>
    %20 = arith.addf %18, %19 : vector<1x8xf32>
    %cst_19 = arith.constant 0.000000e+00 : f32
    %21 = vector.broadcast %cst_19 : f32 to vector<1x8xf32>
    %22 = arith.maximumf %20, %21 : vector<1x8xf32>
    %23 = arith.truncf %22 : vector<1x8xf32> to vector<1x8xbf16>
    %c0_20 = arith.constant 0 : index
    %c0_21 = arith.constant 0 : index
    %24 = vector.load %arg4[%c0_20, %c0_21] : memref<8x8xbf16, #tpu.memory_space<vmem>>, vector<8x8xbf16>
    %cst_22 = arith.constant dense<0.000000e+00> : vector<1x8xf32>
    %25 = tpu.matmul %23, %24, %cst_22 {dimension_numbers = #tpu.dot_dimension_numbers<[1], [0], [0], [1], [0, 0, 1, 1], [], []>} : vector<1x8xbf16>, vector<8x8xbf16>, vector<1x8xf32> -> vector<1x8xf32>
    %c0_23 = arith.constant 0 : index
    %c0_24 = arith.constant 0 : index
    %c0_25 = arith.constant 0 : index
    %26 = vector.load %arg7[%c0_23, %c0_24, %c0_25] : memref<1x1x8xf32, #tpu.memory_space<vmem>>, vector<1x1x8xf32>
    %27 = vector.shape_cast %26 : vector<1x1x8xf32> to vector<1x8xf32>
    %28 = vector.shape_cast %25 : vector<1x8xf32> to vector<1x1x8xf32>
    tpu.vector_store %arg7[%c0_23, %c0_24, %c0_25], %28 {strides = array<i32>} : memref<1x1x8xf32, #tpu.memory_space<vmem>>, vector<1x1x8xf32>,
    return
  }
  func.func @transform_0(%arg0: i32, %arg1: i32) -> (i32, i32, i32, i32) {
    %c0_i32 = arith.constant 0 : i32
    %c0_i32_0 = arith.constant 0 : i32
    %c0_i32_1 = arith.constant 0 : i32
    return %arg0, %arg1, %c0_i32, %c0_i32_0 : i32, i32, i32, i32
  }
  func.func @transform_1(%arg0: i32, %arg1: i32) -> (i32, i32) {
    %c0_i32 = arith.constant 0 : i32
    %c0_i32_0 = arith.constant 0 : i32
    %c0_i32_1 = arith.constant 0 : i32
    return %c0_i32, %c0_i32_0 : i32, i32
  }
  func.func @transform_2(%arg0: i32, %arg1: i32) -> (i32, i32) {
    %c0_i32 = arith.constant 0 : i32
    %c0_i32_0 = arith.constant 0 : i32
    %c0_i32_1 = arith.constant 0 : i32
    return %c0_i32, %c0_i32_0 : i32, i32
  }
  func.func @transform_3(%arg0: i32, %arg1: i32) -> (i32, i32) {
    %c0_i32 = arith.constant 0 : i32
    %c0_i32_0 = arith.constant 0 : i32
    %c0_i32_1 = arith.constant 0 : i32
    return %c0_i32, %c0_i32_0 : i32, i32
  }
  func.func @transform_4(%arg0: i32, %arg1: i32) -> (i32, i32) {
    %c0_i32 = arith.constant 0 : i32
    %c0_i32_0 = arith.constant 0 : i32
    %c0_i32_1 = arith.constant 0 : i32
    return %c0_i32, %c0_i32_0 : i32, i32
  }
  func.func @transform_5(%arg0: i32, %arg1: i32) -> (i32, i32, i32) {
    %c0_i32 = arith.constant 0 : i32
    %c0_i32_0 = arith.constant 0 : i32
    %c0_i32_1 = arith.constant 0 : i32
    return %arg0, %c0_i32, %c0_i32_0 : i32, i32, i32
  }
}

</mosaic_0001>

<bundles_post_ra>
// kernel: tpu_custom_call.1
= control target key start
LH: loop header
LB: loop body
LE: loop exit
PB: predicated region body
PF: predicated region fallthrough
CT: control target
= control target key end

     0   :  { %10 = vsyncpa [#allocation4], 0  ;;  %s1010_s0 = inlined_call_operand.vmem [shape: bf16[2,16,16,4], index: 0, kind: input, shape index: {}]   ;;  %s1011_s1 = inlined_call_operand.vmem [shape: bf16[4,8], index: 1, kind: input, shape index: {}]   ;;  %s1012_s2 = inlined_call_operand.vmem [shape: bf16[8,8], index: 2, kind: input, shape index: {}]   ;;  %s1013_s3 = inlined_call_operand.vmem [shape: f32[1,8], index: 3, kind: input, shape index: {}]   ;;  %s1014_s4 = inlined_call_operand.vmem [shape: f32[1,8], index: 4, kind: input, shape index: {}]   ;;  %s1015_s5 = inlined_call_operand.hbm [shape: f32[2,1,8], index: 5, kind: output, shape index: {}]  }
   0x1   :  { %12 = vsyncpa [#allocation4 + $0x1], 0  ;;  %s882_s18 = smov 0   ;;  %s884_s19 = smov 0  }
   0x2   :  { %s886_s20 = smov 0   ;;  %s888_s21 = smov 0  }
   0x3   :  { %s890_s22 = smov 0   ;;  %s892_s23 = smov 0  }
   0x4 LB: > { %s627_s24 = sadd.s32 4294967295, %s846_s23   ;;  %s628_s25 = sadd.s32 4294967294, %s846_s23   ;;  %s846_s23 = sphi %s892_s23, %s18_s23   ;;  %s842_s22 = sphi %s890_s22, %s1022_s22   ;;  %s838_s21 = sphi %s888_s21, %s1021_s21   ;;  %s834_s20 = sphi %s886_s20, %s1020_s20   ;;  %s830_s19 = sphi %s884_s19, %s1019_s19   ;;  %s826_s18 = sphi %s882_s18, %s1018_s18  }
   0x5   : > { %s30_s26 = sadd.s32 1, %s842_s22  ;;  %s149_s27 = sadd.s32 1, %s834_s20 }
   0x6   : > { %p32_p0 = scmp.ge.s32.totalorder %s30_s26, 2  ;;  %p159_p1 = scmp.ne.s32.totalorder %s834_s20, %s830_s19 }
   0x7   : > { %p160_p2 = scmp.eq.s32.totalorder %s627_s24, 1  ;;  %p165_p3 = scmp.ne.s32.totalorder %s830_s19, %s826_s18 }
   0x8   : > { %s1024_s26 = smov (%p32_p0, %s30_s26), 0  ;;  %p166_p5 = scmp.eq.s32.totalorder %s628_s25, 1 }
   0x9   : > { %p922_p4 = por %p160_p2, %p159_p1  ;;  %s146_s29 = ssub.s32 %s842_s22, %s1024_s26 }
   0xa   : > { %p631_p6 = scmp.ge.s32.totalorder %s846_s23, 1  ;;  %p147_p7 = scmp.eq.s32.totalorder %s146_s29, 0 }
   0xb   : > { %p929_p8 = por %p166_p5, %p165_p3  ;;  %p210_p9 = scmp.lt.s32.totalorder %s846_s23, 3 }
   0xc   : > { %s935_s6 = scalar_select %p147_p7, %s834_s20, %s149_s27  }
   0xd   : > { %p211_p10 = pnand %p631_p6, %p210_p9 }
   0xe   : > { %p243_p11 = scmp.lt.s32.totalorder (!%p211_p10), %s838_s21, 1  ;;  %v848_v0 = vmov (!%p211_p10), 1065369472   ;;  %vm259_vm0 = vcmask (!%p211_p10), 24576   ;;  %v849_v17 = vmov (!%p211_p10), 0.0   ;;  %vm441_vm1 = vcmask (!%p211_p10), 1041408  }
   0xf   : > { %214 = sbr.rel (%p211_p10) target bundleno = 735 (0x2df), region = 40  ;;  %422 = vmatprep.mubr.bf16.mxu0 (!%p211_p10), %v848_v0  ;;  %260 = vst.msk [vmem:[#allocation2] sm:$0x1] (!%p211_p10), %vm259_vm0, %v849_v17  ;;  %682 = vmatprep.subr.bf16.mxu1 (!%p211_p10), %v849_v17  ;;  %v436_v18 = vld [vmem:[%s1011_s1] sm:$0x3] (!%p211_p10)  ;;  %vm850_vm2 = vmmov (!%p211_p10), 0  }
  0x10   : > { %v443_v19 = vsel (!%p211_p10), %vm441_vm1, %v436_v18, 0  ;;  %684 = vmatprep.mubr.msk.bf16.mxu1 (!%p211_p10), %vm850_vm2, %v849_v17  ;;  %vm437_vm3 = vcmask (!%p211_p10), 31744   ;;  %v491_v30 = vld [vmem:[%s1012_s2] sm:$0xf] (!%p211_p10)  ;;  %vm496_vm4 = vcmask (!%p211_p10), 1043456   ;;  %vm492_vm5 = vcmask (!%p211_p10), 64512  }
  0x11   : > { %683 = vmatpush3.bf16.msra.mxu1 (!%p211_p10), %v443_v19  ;;  %v498_v31 = vsel (!%p211_p10), %vm496_vm4, %v491_v30, 0  ;;  %v485_v32 = vld [vmem:[%s1013_s3] sm:$0x1] (!%p211_p10)  ;;  %s240_s27 = sand.u32 (!%p211_p10), 1, %s830_s19   ;;  %s652_s29 = sshll.u32 (!%p211_p10), %s838_s21, 4  ;;  %vm540_vm6 = vcmask (!%p211_p10), 57344  }
  0x12   : > { %688 = vmatprep.subr.bf16.mxu1 (!%p211_p10), %v849_v17  ;;  %v487_v34 = vld [vmem:[%s1014_s4] sm:$0x1] (!%p211_p10)  ;;  %s543_s12 = scalar_lea.sflag (!%p211_p10), [#allocation4], %s240_s27 }
  0x16   : > { %s244_s7 = scalar_select %p243_p11, %s838_s21, 1  ;;  %v293_v21 = vld [vmem:[#allocation2] sm:$0x1] }
  0x17   : > { %s851_s21 = smov [#allocation3]  }
  0x18   : > { %s655_s8 = sshll.u32 %s244_s7, 7  ;;  %s241_s7 = scalar_lea.vmem [#allocation3], %s240_s27 }
  0x19   : > { %s251_s11 = scalar_lea.vmem %s1010_s0, %s655_s8  ;;  %s555_s8 = sshll.u32 %s241_s7, 4  ;;  %s965_s8 = int_to_ptr.vmem [resolvable:$true] %s555_s8 }
  0x1a   : > { %v752_v1 = vld [vmem:[%s251_s11 + $0x40] sm:$0xff]   ;;  %v754_v3 = vld [vmem:[%s251_s11 + $0x48] sm:$0xff]   ;;  %v756_v5 = vld [vmem:[%s251_s11 + $0x50] sm:$0xff]   ;;  %s768_s13 = scalar_lea.vmem %s965_s8, 16  ;;  %s772_s14 = sshll.u32 %s851_s21, 4  ;;  %s773_s14 = int_to_ptr.vmem [resolvable:$false] %s772_s14 }
  0x1b   : > { %v753_v2 = vld [vmem:[%s251_s11] sm:$0xff]   ;;  %656 = vmatprep.subr.bf16.mxu0 %v752_v1  ;;  %v755_v4 = vld [vmem:[%s251_s11 + $0x8] sm:$0xff]   ;;  %v757_v6 = vld [vmem:[%s251_s11 + $0x10] sm:$0xff]   ;;  %p769_p12 = scmp.ne.s32.totalorder %s965_s8, %s768_s13  ;;  %s774_s15 = scalar_lea.vmem %s773_s14, 32 }
  0x1c   : > { %657 = vmatpush3.bf16.msra.mxu0 %v753_v2  ;;  %v758_v7 = vld [vmem:[%s251_s11 + $0x58] sm:$0xff]   ;;  %v760_v9 = vld [vmem:[%s251_s11 + $0x60] sm:$0xff]   ;;  %v762_v11 = vld [vmem:[%s251_s11 + $0x68] sm:$0xff]   ;;  %p775_p1 = scmp.lt.s32.totalorder %s965_s8, %s773_s14  ;;  %p776_p2 = scmp.lt.s32.totalorder %s774_s15, %s768_s13 }
  0x1d   : > { %658 = vmatprep.subr.bf16.mxu0 %v754_v3  ;;  %v759_v8 = vld [vmem:[%s251_s11 + $0x18] sm:$0xff]   ;;  %v761_v10 = vld [vmem:[%s251_s11 + $0x20] sm:$0xff]   ;;  %v763_v12 = vld [vmem:[%s251_s11 + $0x28] sm:$0xff]   ;;  %p770_p13 = pnand %p769_p12, %p922_p4 }
  0x1e   : > { %v764_v13 = vld [vmem:[%s251_s11 + $0x70] sm:$0xff]   ;;  %v766_v15 = vld [vmem:[%s251_s11 + $0x78] sm:$0xff]   ;;  %p777_p3 = por %p776_p2, %p775_p1 }
  0x1f   : > { %v765_v14 = vld [vmem:[%s251_s11 + $0x30] sm:$0xff]   ;;  %v767_v16 = vld [vmem:[%s251_s11 + $0x38] sm:$0xff]   ;;  %s963_s11 = scalar_lea.hbm %s1015_s5, %s652_s29  ;;  %p771_p0 = pneg %p770_p13 }
  0x20   : > { %659 = vmatpush3.bf16.msra.mxu0 %v755_v4 }
  0x21   : > { %660 = vmatprep.subr.bf16.mxu0 %v756_v5  ;;  %p778_p5 = pnand %p777_p3, %p771_p0 }
  0x24   : > { %661 = vmatpush3.bf16.msra.mxu0 %v757_v6 }
  0x25   : > { %662 = vmatprep.subr.bf16.mxu0 %v758_v7 }
  0x28   : > { %663 = vmatpush3.bf16.msra.mxu0 %v759_v8 }
  0x29   : > { %664 = vmatprep.subr.bf16.mxu0 %v760_v9 }
  0x2c   : > { %665 = vmatpush3.bf16.msra.mxu0 %v761_v10 }
  0x2d   : > { %666 = vmatprep.subr.bf16.mxu0 %v762_v11 }
  0x30   : > { %667 = vmatpush3.bf16.msra.mxu0 %v763_v12 }
  0x31   : > { %668 = vmatprep.subr.bf16.mxu0 %v764_v13 }
  0x34   : > { %669 = vmatpush3.bf16.msra.mxu0 %v765_v14 }
  0x35   : > { %670 = vmatprep.subr.bf16.mxu0 %v766_v15 }
  0x38   : > { %671 = vmatpush3.bf16.msra.mxu0 %v767_v16 }
  0x3b   : > { %423 = vmatmul.mubr.bf16.vlgmr.msra.gmra.mrb[0].mxu0 %v848_v0 }
 0x10e   : > { %v672_v20 = vpop.f32.mrb[0].mxu0 }
 0x10f   : > { %v673_v22 = vpop.f32.mrb[1].mxu0 }
 0x110   : > { %v674_v23 = vadd.f32 %v673_v22, %v672_v20  ;;  %v675_v24 = vpop.f32.mrb[2].mxu0 }
 0x111   : > { %v676_v25 = vpop.f32.mrb[3].mxu0 }
 0x112   : > { %v430_v26 = vadd.f32 %v674_v23, %v293_v21 }
 0x114   : > { %432 = vst.msk [vmem:[#allocation2] sm:$0x1] %vm259_vm0, %v430_v26 }
 0x11b   : > { %v433_v27 = vld [vmem:[#allocation2] sm:$0x1] }
 0x11c   : > { %v434_v28 = vmul.f32 0.00390625, %v433_v27 }
 0x11e   : > { %v435_v29 = vpack.c.bf16 %v434_v28, %v434_v28 }
 0x120   : > { %685 = vmatmul.mubr.msk.bf16.vlgmr.msra.gmra.mrb[0].mxu1 %vm437_vm3, %v435_v29 }
 0x121   : > { %690 = vmatprep.mubr.msk.bf16.mxu1 %vm850_vm2, %v849_v17  ;;  %689 = vmatpush3.bf16.msra.mxu1 %v498_v31 }
 0x1f3   : > { %v479_v33 = vpop.f32.mrb[0].mxu1 }
 0x1f4   : > { %v486_v35 = vmul.f32 %v485_v32, %v479_v33  ;;  %v686_v36 = vpop.f32.mrb[1].mxu1 }
 0x1f5   : > { %v482_v37 = vpop.f32.mrb[2].mxu1 }
 0x1f6   : > { %v488_v38 = vadd.f32 %v487_v34, %v486_v35  ;;  %v687_v39 = vpop.f32.mrb[3].mxu1 }
 0x1f8   : > { %v489_v40 = vmax.f32 %v488_v38, 0.0 }
 0x1fa   : > { %v490_v41 = vpack.c.bf16 %v489_v40, %v489_v40 }
 0x1fc   : > { %691 = vmatmul.mubr.msk.bf16.vlgmr.msra.gmra.mrb[4].mxu1 %vm492_vm5, %v490_v41 }
 0x2cf   : > { %v534_v42 = vpop.f32.mrb[4].mxu1 }
 0x2d0   : > { %541 = vst.msk [vmem:[%s241_s7] sm:$0x1] %vm540_vm6, %v534_v42  ;;  %v692_v43 = vpop.f32.mrb[5].mxu1 }
 0x2d1   : > { %v537_v44 = vpop.f32.mrb[6].mxu1 }
 0x2d2   : > { %781 = shalt.err (!%p778_p5)
}
 0x2d3   : > { %s782_s16 = scalar_lea.hbm %s963_s11, 16  ;;  %s786_s25 = scalar_lea.hbm %s1015_s5, 32 }
 0x2d4   : > { %p783_p6 = scmp.ne.s32.totalorder %s963_s11, %s782_s16  ;;  %p787_p10 = scmp.lt.u32.totalorder %s963_s11, %s1015_s5 }
 0x2d5   : > { %p788_p11 = scmp.lt.u32.totalorder %s786_s25, %s782_s16  ;;  %p790_p13 = scmp.lt.u32.totalorder %s782_s16, %s963_s11 }
 0x2d6   : > { %p784_p7 = pnand %p783_p6, %p922_p4 }
 0x2d7   : > { %p789_p12 = por %p788_p11, %p787_p10 }
 0x2d8   : > { %p785_p9 = pneg %p784_p7 }
 0x2d9   : > { %p791_p0 = por %p790_p13, %p789_p12 }
 0x2db   : > { %p792_p1 = pnand %p791_p0, %p785_p9 }
 0x2dd   : > { %795 = shalt.err (!%p792_p1)
}
 0x2de   : > { %694 = dma.vmem_to_hbm [thread:$0]  (%p922_p4), %s965_s8, 16, %s963_s11, %s543_s12   ;;  %v693_v45 = vpop.f32.mrb[7].mxu1 }
 0x2df PF: > { %p700_p2 = scmp.ge.s32.totalorder %s846_s23, 2  ;;  %s567_s7 = sand.u32 1, %s826_s18  }
 0x2e0   : > { %s568_s9 = scalar_lea.sflag [#allocation4], %s567_s7 }
 0x2e1   : > { %p697_p3 = pnand %p700_p2, %p929_p8 }
 0x2e3   : > { %821 = dma.done.wait (!%p697_p3), %s568_s9, 16  }
 0x2e4   : > { %823 = vsyncadd (!%p697_p3), %s568_s9, 4294967280  ;;  %s18_s23 = sadd.s32 1, %s846_s23   ;;  %s1018_s18 = smov %s830_s19 }
 0x2e5   : > { %p15_p5 = scmp.ge.s32.totalorder %s18_s23, 4   ;;  %s1019_s19 = smov %s834_s20 }
 0x2e6   : > { %s1020_s20 = smov %s935_s6  ;;  %s1021_s21 = smov %s842_s22 }
 0x2e7   : > { %s1022_s22 = smov %s1024_s26  ;;  %17 = sbr.rel (!%p15_p5) target bundleno = 4 (0x4), region = 79 }
 0x2ee   :  { %572 = vsyncpa [#allocation4], 1 }
 0x2ef   :  { %574 = vsyncpa [#allocation4 + $0x1], 1 }

</bundles_post_ra>
